<compile_context>
chip_gen: v6e
topology: v6e:2x2x1
jax: 0.10.0
libtpu: 0.0.40
codegen_flags: <defaults>
</compile_context>

<pallas_src>
import jax
import jax.numpy as jnp
from jax.experimental import pallas as pl
from jax.experimental.pallas import tpu as pltpu


def _relu_linear_softmax_kernel(x_ref, wt_ref, b_ref, o_ref):
    # x_ref:  (TB, IN)     streamed activation tile
    # wt_ref: (IN, OUT_p)  resident, pre-transposed weight (W^T)
    # b_ref:  (1, OUT_p)   resident bias (padded columns, if any, hold -1e30)
    # o_ref:  (TB, OUT_p)  output tile
    v1 = jnp.maximum(x_ref[...], 0.0)                         # relu (VPU)
    logits = jnp.dot(v1, wt_ref[...],
                     preferred_element_type=jnp.float32)      # MXU, f32 acc
    logits = logits + b_ref[...]                              # bias (+ folded mask)
    m = jnp.max(logits, axis=1, keepdims=True)                # stable softmax
    e = jnp.exp(logits - m)
    s = jnp.sum(e, axis=1, keepdims=True)
    o_ref[...] = (e * pl.reciprocal(s, approx=False)).astype(o_ref.dtype)


def _round_up(x, m):
    return (x + m - 1) // m * m


def pack_params(weight, bias, *, lane=128):
    """One-time pre-pack of Linear params (hoisted out of the per-call path).

    Transposes W (OUT, IN) -> (IN, OUT) so the kernel feeds the MXU directly.
    If OUT is large enough to benefit from a lane-dense output, pads OUT up to
    a multiple of 128 with zero weight columns and folds the softmax column
    mask into the bias (-1e30 in padded columns).
    """
    OUT, IN = weight.shape
    assert bias.shape == (OUT,)
    wt = weight.T                                             # (IN, OUT)
    if OUT >= lane and OUT % lane != 0:
        OUT_p = _round_up(OUT, lane)
        wt = jnp.zeros((IN, OUT_p), weight.dtype).at[:, :OUT].set(wt)
        b = jnp.full((1, OUT_p), -1e30, bias.dtype).at[0, :OUT].set(bias)
    else:
        b = bias.reshape(1, OUT)
    return wt, b


def relu_linear_softmax(x, wt_p, b_p, out_features, *, tb_max=512):
    """x: (B, IN) f32; wt_p/b_p from pack_params(); returns softmax(relu(x) @ W^T + b)."""
    B, IN = x.shape
    IN_w, OUT_p = wt_p.shape
    assert IN == IN_w and b_p.shape == (1, OUT_p)

    # Batch tiling: a full-array block (TB == B) is always legal; for large B
    # use 512-row tiles (multiple of 256 -> fills the 256-row MXU, ~HBM
    # roofline on v6e).  The ragged last block is handled by Pallas; overhang
    # rows only produce output rows that out_shape discards.
    TB = B if B <= tb_max else tb_max
    grid = (pl.cdiv(B, TB),)

    # Explicit VMEM budget (v7x has 64 MiB total): resident W^T + bias plus
    # double-buffered x/out tiles.  Only raise the scoped limit when the
    # default (~32 MiB) would not be enough.
    itemsize = jnp.dtype(x.dtype).itemsize
    needed = itemsize * (IN * OUT_p + OUT_p) + 2 * itemsize * TB * (IN + OUT_p)
    vmem_limit = (int(min(needed * 2, 100 * 1024 * 1024))
                  if needed > 32 * 1024 * 1024 else None)
    # TODO(synk): if W^T itself no longer fits VMEM (large IN*OUT on v7x), add a
    # K-axis grid dimension with an f32 accumulator scratch (pl.when init/store).

    out = pl.pallas_call(
        _relu_linear_softmax_kernel,
        out_shape=jax.ShapeDtypeStruct((B, OUT_p), x.dtype),
        grid=grid,
        in_specs=[
            pl.BlockSpec((TB, IN), lambda i: (i, 0)),        # streamed x tile
            pl.BlockSpec((IN, OUT_p), lambda i: (0, 0)),     # resident W^T
            pl.BlockSpec((1, OUT_p), lambda i: (0, 0)),      # resident bias
        ],
        out_specs=pl.BlockSpec((TB, OUT_p), lambda i: (i, 0)),
        compiler_params=pltpu.CompilerParams(
            dimension_semantics=("parallel",),
            vmem_limit_bytes=vmem_limit,
        ),
    )(x, wt_p, b_p)

    if OUT_p != out_features:
        out = out[:, :out_features]
    return out


def reference(x, weight, bias):
    v1 = jnp.maximum(x, 0.0)
    v0 = v1 @ weight.T + bias
    return jax.nn.softmax(v0, axis=1)


if __name__ == "__main__":
    key = jax.random.PRNGKey(0)
    kx, kw, kb = jax.random.split(key, 3)

    # Shapes from the PyTorch module: x0 = randn(3, 2), Linear(2, 3).
    x0 = jax.random.normal(kx, (3, 2), dtype=jnp.float32)
    bound = 1.0 / jnp.sqrt(2.0)   # PyTorch Linear init bound, fan_in = 2
    weight = jax.random.uniform(kw, (3, 2), minval=-bound, maxval=bound,
                                dtype=jnp.float32)
    bias = jax.random.uniform(kb, (3,), minval=-bound, maxval=bound,
                              dtype=jnp.float32)

    wt_p, b_p = pack_params(weight, bias)        # one-time pre-pack (hoisted)
    out = relu_linear_softmax(x0, wt_p, b_p, out_features=3)
    out = jax.block_until_ready(out)

    ref = reference(x0, weight, bias)
    assert out.shape == (3, 3)
    assert jnp.allclose(out, ref, atol=1e-5, rtol=1e-5)
    print("KERNEL_OK")
</pallas_src>

<mosaic_0001>
module attributes {stable_mosaic.version = 11 : i64} {
  func.func @_relu_linear_softmax_kernel(%arg0: i32, %arg1: memref<3x2xf32, #tpu.memory_space<vmem>>, %arg2: memref<2x3xf32, #tpu.memory_space<vmem>>, %arg3: memref<1x3xf32, #tpu.memory_space<vmem>>, %arg4: memref<3x3xf32, #tpu.memory_space<vmem>>) attributes {dimension_semantics = [#tpu.dimension_semantics<parallel>], iteration_bounds = array<i64: 1>, scalar_prefetch = 0 : i64, scratch_operands = 0 : i64, tpu.core_type = #tpu.core_type<tc>, window_params = [{transform_indices = @transform_0, window_bounds = array<i64: 3, 2>}, {pipeline_mode = #tpu.pipeline_mode<synchronous>, transform_indices = @transform_1, window_bounds = array<i64: 2, 3>}, {pipeline_mode = #tpu.pipeline_mode<synchronous>, transform_indices = @transform_2, window_bounds = array<i64: 1, 3>}, {transform_indices = @transform_3, window_bounds = array<i64: 3, 3>}]} {
    %c0 = arith.constant 0 : index
    %c0_0 = arith.constant 0 : index
    %0 = vector.load %arg1[%c0, %c0_0] : memref<3x2xf32, #tpu.memory_space<vmem>>, vector<3x2xf32>
    %cst = arith.constant 0.000000e+00 : f32
    %1 = vector.broadcast %cst : f32 to vector<3x2xf32>
    %2 = arith.maximumf %0, %1 : vector<3x2xf32>
    %c0_1 = arith.constant 0 : index
    %c0_2 = arith.constant 0 : index
    %3 = vector.load %arg2[%c0_1, %c0_2] : memref<2x3xf32, #tpu.memory_space<vmem>>, vector<2x3xf32>
    %cst_3 = arith.constant dense<0.000000e+00> : vector<3x3xf32>
    %4 = tpu.matmul %2, %3, %cst_3 {dimension_numbers = #tpu.dot_dimension_numbers<[1], [0], [0], [1], [0, 0, 1, 1], [], []>} : vector<3x2xf32>, vector<2x3xf32>, vector<3x3xf32> -> vector<3x3xf32>
    %c0_4 = arith.constant 0 : index
    %c0_5 = arith.constant 0 : index
    %5 = vector.load %arg3[%c0_4, %c0_5] : memref<1x3xf32, #tpu.memory_space<vmem>>, vector<1x3xf32>
    %6 = vector.broadcast %5 : vector<1x3xf32> to vector<3x3xf32>
    %7 = arith.addf %4, %6 : vector<3x3xf32>
    %cst_6 = arith.constant dense<0xFF800000> : vector<3xf32>
    %8 = vector.multi_reduction <maximumf>, %7, %cst_6 [1] : vector<3x3xf32> to vector<3xf32>
    %9 = vector.shape_cast %8 : vector<3xf32> to vector<3x1xf32>
    %10 = vector.broadcast %9 : vector<3x1xf32> to vector<3x3xf32>
    %11 = arith.subf %7, %10 : vector<3x3xf32>
    %12 = math.exp %11 : vector<3x3xf32>
    %cst_7 = arith.constant dense<0.000000e+00> : vector<3xf32>
    %13 = vector.multi_reduction <add>, %12, %cst_7 [1] : vector<3x3xf32> to vector<3xf32>
    %14 = vector.shape_cast %13 : vector<3xf32> to vector<3x1xf32>
    %15 = tpu.reciprocal %14 : vector<3x1xf32> -> vector<3x1xf32>
    %16 = vector.broadcast %15 : vector<3x1xf32> to vector<3x3xf32>
    %17 = arith.mulf %12, %16 : vector<3x3xf32>
    %c0_8 = arith.constant 0 : index
    %c0_9 = arith.constant 0 : index
    %18 = vector.load %arg4[%c0_8, %c0_9] : memref<3x3xf32, #tpu.memory_space<vmem>>, vector<3x3xf32>
    tpu.vector_store %arg4[%c0_8, %c0_9], %17 {strides = array<i32>} : memref<3x3xf32, #tpu.memory_space<vmem>>, vector<3x3xf32>,
    return
  }
  func.func @transform_0(%arg0: i32) -> (i32, i32) {
    %c0_i32 = arith.constant 0 : i32
    %c0_i32_0 = arith.constant 0 : i32
    return %arg0, %c0_i32 : i32, i32
  }
  func.func @transform_1(%arg0: i32) -> (i32, i32) {
    %c0_i32 = arith.constant 0 : i32
    %c0_i32_0 = arith.constant 0 : i32
    %c0_i32_1 = arith.constant 0 : i32
    return %c0_i32, %c0_i32_0 : i32, i32
  }
  func.func @transform_2(%arg0: i32) -> (i32, i32) {
    %c0_i32 = arith.constant 0 : i32
    %c0_i32_0 = arith.constant 0 : i32
    %c0_i32_1 = arith.constant 0 : i32
    return %c0_i32, %c0_i32_0 : i32, i32
  }
  func.func @transform_3(%arg0: i32) -> (i32, i32) {
    %c0_i32 = arith.constant 0 : i32
    %c0_i32_0 = arith.constant 0 : i32
    return %arg0, %c0_i32 : i32, i32
  }
}

</mosaic_0001>

<bundles_post_ra>
// kernel: tpu_custom_call.1
= control target key start
LH: loop header
LB: loop body
LE: loop exit
PB: predicated region body
PF: predicated region fallthrough
CT: control target
= control target key end

     0   :  { %vm29_vm0 = vcmask 1041408   ;;  %v169_v1 = vmov 0.0   ;;  %vm170_vm1 = vmmov 0   ;;  %vm25_vm2 = vcmask 15360   ;;  %s207_s0 = inlined_call_operand.vmem [shape: f32[3,2], index: 0, kind: input, shape index: {}]   ;;  %s208_s1 = inlined_call_operand.vmem [shape: f32[2,3], index: 1, kind: input, shape index: {}]   ;;  %s209_s2 = inlined_call_operand.vmem [shape: f32[1,3], index: 2, kind: input, shape index: {}]   ;;  %s210_s3 = inlined_call_operand.hbm [shape: f32[3,3], index: 3, kind: output, shape index: {}]  }
   0x1   :  { %v17_v0 = vld [vmem:[%s208_s1] sm:$0x3]  ;;  %135 = vmatprep.subr.mxu0 %v169_v1  ;;  %137 = vmatprep.mubr.msk.f32.mxu0 %vm170_vm1, %v169_v1 }
   0x2   :  { %v15_v2 = vld [vmem:[%s207_s0] sm:$0x7] }
   0x3   :  { %8 = vsyncpa [#allocation3], 0  ;;  %136 = vmatpush3.msk.msra.mxu0 %vm29_vm0, %v17_v0  ;;  %v16_v3 = vmax.f32 %v15_v2, 0.0  ;;  %v130_v4 = vld [vmem:[%s209_s2] ss:$0 sm:$0xff]  ;;  %vm103_vm3 = vcmask 18432  }
   0x4   :  { %s171_s0 = smov [#allocation2]  }
   0x5   :  { %138 = vmatmul.mubr.msk.f32.vlgmr.msra.gmra.mxu0 %vm25_vm2, %v16_v3  ;;  %s122_s1 = sshll.u32 %s171_s0, 4  ;;  %s123_s1 = int_to_ptr.vmem [resolvable:$true] %s122_s1 }
   0x6   :  { %s147_s2 = scalar_lea.vmem %s123_s1, 64  ;;  %p152_p1 = scmp.lt.s32.totalorder %s123_s1, %s123_s1 }
   0x7   :  { %p148_p0 = scmp.ne.s32.totalorder %s123_s1, %s147_s2  ;;  %p153_p2 = scmp.lt.s32.totalorder %s147_s2, %s147_s2 }
   0x9   :  { %p154_p3 = por %p153_p2, %p152_p1 }
   0xb   :  { %p155_p4 = pnand %p154_p3, %p148_p0 }
  0xc5   :  { %v99_v5 = vpop.f32.mrf.mxu0 }
  0xc6   :  { %v100_v6 = vadd.f32 %v130_v4, %v99_v5 }
  0xc7   :  { %v139_v7 = vpop.f32.mrf.mxu0 }
  0xc8   :  { %v104_v8 = vsel %vm103_vm3, %v100_v6, -inf }
  0xc9   :  { %105 = vmax.xlane.f32.xlu0 %v104_v8 }
 0x152   :  { %v106_v9 = vpop.xlane.xlu0 %105 }
 0x153   :  { %v107_v10 = vsub.f32 %v100_v6, %v106_v9 }
 0x155   :  { %v108_v11 = vmul.f32 1.442695, %v107_v10 }
 0x157   :  { %143 = vpow2.f32 %v108_v11 }
 0x164   :  { %v144_v12 = vpop.eup %143 }
 0x165   :  { %v110_v13 = vsel %vm103_vm3, %v144_v12, 0.0 }
 0x166   :  { %111 = vadd.xlane.f32.xlu0 %v110_v13 }
 0x1ef   :  { %v112_v14 = vpop.xlane.xlu0 %111 }
 0x1f0   :  { %145 = vrcp.f32 %v112_v14 }
 0x1fd   :  { %v146_v15 = vpop.eup %145 }
 0x1fe   :  { %v114_v16 = vmul.f32 %v146_v15, %v144_v12 }
 0x200   :  { %115 = vst.msk [vmem:[#allocation2] sm:$0x7] %vm103_vm3, %v114_v16 }
 0x201   :  { %158 = shalt.err (!%p155_p4)
}
 0x202   :  { %125 = dma.vmem_to_hbm [thread:$0]  %s123_s1, 64, %s210_s3, [#allocation3]  }
 0x203   :  { %167 = dma.done.wait [#allocation3], 64  }
 0x204   :  { %168 = vsyncadd [#allocation3], 4294967232 }
 0x205   :  { %129 = vsyncpa [#allocation3], 1 }

</bundles_post_ra>
